<compile_context>
chip_gen: v5e
topology: v5e:2x2
jax: 0.10.0
libtpu: 0.0.40
codegen_flags: <defaults>
</compile_context>

<pallas_src>
import functools
import math

import numpy as np
import jax
import jax.numpy as jnp
from jax.experimental import pallas as pl
from jax.experimental.pallas import tpu as pltpu

_NEG = -1e30  # "not a candidate" additive fill: far below any real logit (we max logits, not probs)


def _round_up(a, m):
    return (a + m - 1) // m * m


# ----------------------- Pass 1: fused per-node logits (B_pad, F_pad) -----------------------

def _logits_kernel(x_ref, w_ref, b_ref, out_ref):
    out_ref[...] = (
        jnp.dot(x_ref[...], w_ref[...], preferred_element_type=jnp.float32)
        + b_ref[...].astype(jnp.float32)
    )


def _compute_logits(x_p, w_p, b_p, *, bt, jn):
    B_pad, C = x_p.shape
    _, F_pad = w_p.shape
    return pl.pallas_call(
        _logits_kernel,
        out_shape=jax.ShapeDtypeStruct((B_pad, F_pad), jnp.float32),
        grid_spec=pltpu.PrefetchScalarGridSpec(
            num_scalar_prefetch=0,
            grid=(B_pad // bt, F_pad // jn),
            in_specs=[
                pl.BlockSpec((bt, C), lambda b, j: (b, 0)),   # x batch tile (C resident, small)
                pl.BlockSpec((C, jn), lambda b, j: (0, j)),   # W node tile
                pl.BlockSpec((1, jn), lambda b, j: (0, j)),   # bias node tile
            ],
            out_specs=pl.BlockSpec((bt, jn), lambda b, j: (b, j)),
        ),
        compiler_params=pltpu.CompilerParams(
            dimension_semantics=("parallel", "parallel"),
        ),
    )(x_p, w_p, b_p)


# --------------------- Pass 2: hierarchical max over {self} ∪ children ----------------------

def _hier_max_kernel(logits_ref, maskt_ref, out_ref, acc_ref, *, block_j, chunk):
    j = pl.program_id(2)

    @pl.when(j == 0)
    def _init():
        acc_ref[...] = jnp.full(acc_ref.shape, _NEG, dtype=jnp.float32)

    lg = logits_ref[...]                                   # (bt, jt) f32, precomputed logits
    jstart = pl.multiple_of(j * block_j, block_j)
    mt = maskt_ref[pl.ds(jstart, block_j), :]              # (jt, it) int8 chunk of resident slab

    # Chunked masked-max reduction: small (bt, cj, it) slabs kept in registers; acc_ref
    # is read/written exactly once per grid step.
    acc = acc_ref[...]                                     # (bt, it) f32
    for c in range(block_j // chunk):                      # static unroll, cj = 8 sublane rows
        l = lg[:, c * chunk:(c + 1) * chunk]               # (bt, cj)
        madd = jnp.where(mt[c * chunk:(c + 1) * chunk, :] != 0,
                         jnp.float32(0.0), jnp.float32(_NEG))   # (cj, it) additive mask
        cand = l[:, :, None] + madd[None, :, :]            # (bt, cj, it): one vadd per element
        acc = jnp.maximum(acc, jnp.max(cand, axis=1))
    acc_ref[...] = acc

    @pl.when(j == pl.num_programs(2) - 1)
    def _finalize():
        # Single sigmoid per output element (monotonicity: max(sigmoid(z)) == sigmoid(max(z))).
        out_ref[...] = jax.nn.sigmoid(acc_ref[...]).astype(out_ref.dtype)


def hierarchical_dense(x, w, bias, mask, *, block_i=128, block_j=128, chunk=8, max_bt=32):
    """x: (B, C); w: (C, F) fused per-node weights; bias: (1, F); mask: (F, F) parent->child."""
    B, C = x.shape
    Cw, F = w.shape
    assert Cw == C and bias.shape == (1, F) and mask.shape == (F, F)
    assert block_i % 128 == 0 and block_j % 128 == 0
    assert chunk % 8 == 0 and block_j % chunk == 0

    it, jt = block_i, block_j
    f_tile = (it * jt) // math.gcd(it, jt)
    F_pad = _round_up(F, f_tile)

    # Batch tile: cap at max_bt, pad B to a multiple of it (no more "bt = B" VMEM time bomb).
    bt = min(max_bt, _round_up(B, 8))
    B_pad = _round_up(B, bt)

    # The node's own prediction is always a candidate (PyTorch module starts with it).
    mask_i8 = jnp.maximum(jnp.asarray(mask, jnp.int8), jnp.eye(F, dtype=jnp.int8))

    # Lane-dense padding; padded node columns have an all-zero mask so they are never
    # selected, and padded batch rows are sliced off below.
    x_p = jnp.pad(x.astype(jnp.float32), ((0, B_pad - B), (0, 0)))
    w_p = jnp.pad(w.astype(jnp.float32), ((0, 0), (0, F_pad - F)))
    b_p = jnp.pad(bias.astype(jnp.float32), ((0, 0), (0, F_pad - F)))
    # Transposed int8 mask: mask_t[j, i] != 0 iff node j is node i itself or an in-set child.
    mask_t = jnp.pad(mask_i8.T, ((0, F_pad - F), (0, F_pad - F)))

    # Pass 1: logits computed exactly once.
    logits = _compute_logits(x_p, w_p, b_p, bt=bt, jn=jt)

    # Pass 2: hierarchical max.  (i, b, j): j is the reduction axis (innermost).
    grid = (F_pad // it, B_pad // bt, F_pad // jt)
    kernel = functools.partial(_hier_max_kernel, block_j=jt, chunk=chunk)

    out = pl.pallas_call(
        kernel,
        out_shape=jax.ShapeDtypeStruct((B_pad, F_pad), jnp.float32),
        grid_spec=pltpu.PrefetchScalarGridSpec(
            num_scalar_prefetch=0,
            grid=grid,
            in_specs=[
                pl.BlockSpec((bt, jt), lambda i, b, j: (b, j)),       # precomputed logits tile
                pl.BlockSpec((F_pad, it), lambda i, b, j: (0, i)),    # mask slab: resident across b, j
            ],
            out_specs=pl.BlockSpec((bt, it), lambda i, b, j: (b, i)),
            scratch_shapes=[pltpu.VMEM((bt, it), jnp.float32)],       # running-max accumulator
        ),
        compiler_params=pltpu.CompilerParams(
            dimension_semantics=("parallel", "parallel", "arbitrary"),
            vmem_limit_bytes=32 * 1024 * 1024,
        ),
    )(logits, mask_t)

    return out[:B, :F]


def build_child_mask(functions, go_graph):
    """mask[i, j] = 1 iff j == i or functions[j] is a child of functions[i] (restricted to the set)."""
    fn_set = set(functions)
    idx = {f: k for k, f in enumerate(functions)}
    n = len(functions)
    m = np.zeros((n, n), dtype=np.int8)
    for i, node in enumerate(functions):
        m[i, i] = 1
        for child in set(go_graph[node]["children"]).intersection(fn_set):
            m[i, idx[child]] = 1
    return jnp.asarray(m)  # int8


if __name__ == "__main__":
    # Synthetic GO DAG over 200 functions: node k's children are 2k+1, 2k+2 (binary tree),
    # plus an out-of-set child that must be ignored (as in the PyTorch module).
    F = 200
    functions = [f"GO:{k:07d}" for k in range(F)]
    GO_GRAPH = {}
    for k in range(F):
        children = [functions[c] for c in (2 * k + 1, 2 * k + 2) if c < F]
        children.append("GO:NOT_IN_FUNCTION_SET")
        GO_GRAPH[functions[k]] = {"children": children}

    B, C = 4, 32
    key = jax.random.PRNGKey(0)
    kx, kw, kb = jax.random.split(key, 3)
    x = jax.random.normal(kx, (B, C), dtype=jnp.float32)
    # The F DecisionLayer Linear(C, 1) layers fused into one (C, F) weight and (1, F) bias.
    w = jax.random.normal(kw, (C, F), dtype=jnp.float32) * 0.1
    bias = jax.random.normal(kb, (1, F), dtype=jnp.float32) * 0.1
    mask = build_child_mask(functions, GO_GRAPH)  # (F, F) int8

    out = hierarchical_dense(x, w, bias, mask)
    out = jax.block_until_ready(out)

    # Plain-JAX reference mirroring the PyTorch module: per-node sigmoid, then max over
    # {node} ∪ in-set children.
    probs = jax.nn.sigmoid(x @ w + bias)                               # (B, F)
    cand = jnp.where(mask[None, :, :] != 0, probs[:, None, :], -1.0)   # (B, F, F)
    ref = jnp.max(cand, axis=-1)

    assert out.shape == (B, F)
    assert bool(jnp.allclose(out, ref, atol=1e-5, rtol=1e-5)), float(jnp.max(jnp.abs(out - ref)))

    print("KERNEL_OK")
</pallas_src>

<mosaic_0001>
module attributes {stable_mosaic.version = 11 : i64} {
  func.func @_logits_kernel(%arg0: i32, %arg1: i32, %arg2: memref<8x32xf32, #tpu.memory_space<vmem>>, %arg3: memref<32x128xf32, #tpu.memory_space<vmem>>, %arg4: memref<1x128xf32, #tpu.memory_space<vmem>>, %arg5: memref<8x128xf32, #tpu.memory_space<vmem>>) attributes {dimension_semantics = [#tpu.dimension_semantics<parallel>, #tpu.dimension_semantics<parallel>], iteration_bounds = array<i64: 1, 2>, scalar_prefetch = 0 : i64, scratch_operands = 0 : i64, tpu.core_type = #tpu.core_type<tc>, window_params = [{transform_indices = @transform_0, window_bounds = array<i64: 8, 32>}, {transform_indices = @transform_1, window_bounds = array<i64: 32, 128>}, {transform_indices = @transform_2, window_bounds = array<i64: 1, 128>}, {transform_indices = @transform_3, window_bounds = array<i64: 8, 128>}]} {
    %c0 = arith.constant 0 : index
    %c0_0 = arith.constant 0 : index
    %0 = vector.load %arg2[%c0, %c0_0] : memref<8x32xf32, #tpu.memory_space<vmem>>, vector<8x32xf32>
    %c0_1 = arith.constant 0 : index
    %c0_2 = arith.constant 0 : index
    %1 = vector.load %arg3[%c0_1, %c0_2] : memref<32x128xf32, #tpu.memory_space<vmem>>, vector<32x128xf32>
    %cst = arith.constant dense<0.000000e+00> : vector<8x128xf32>
    %2 = tpu.matmul %0, %1, %cst {dimension_numbers = #tpu.dot_dimension_numbers<[1], [0], [0], [1], [0, 0, 1, 1], [], []>} : vector<8x32xf32>, vector<32x128xf32>, vector<8x128xf32> -> vector<8x128xf32>
    %c0_3 = arith.constant 0 : index
    %c0_4 = arith.constant 0 : index
    %3 = vector.load %arg4[%c0_3, %c0_4] : memref<1x128xf32, #tpu.memory_space<vmem>>, vector<1x128xf32>
    %4 = vector.broadcast %3 : vector<1x128xf32> to vector<8x128xf32>
    %5 = arith.addf %2, %4 : vector<8x128xf32>
    %c0_5 = arith.constant 0 : index
    %c0_6 = arith.constant 0 : index
    %6 = vector.load %arg5[%c0_5, %c0_6] : memref<8x128xf32, #tpu.memory_space<vmem>>, vector<8x128xf32>
    tpu.vector_store %arg5[%c0_5, %c0_6], %5 {strides = array<i32>} : memref<8x128xf32, #tpu.memory_space<vmem>>, vector<8x128xf32>,
    return
  }
  func.func @transform_0(%arg0: i32, %arg1: i32) -> (i32, i32) {
    %c0_i32 = arith.constant 0 : i32
    %c0_i32_0 = arith.constant 0 : i32
    return %arg0, %c0_i32 : i32, i32
  }
  func.func @transform_1(%arg0: i32, %arg1: i32) -> (i32, i32) {
    %c0_i32 = arith.constant 0 : i32
    %c0_i32_0 = arith.constant 0 : i32
    return %c0_i32, %arg1 : i32, i32
  }
  func.func @transform_2(%arg0: i32, %arg1: i32) -> (i32, i32) {
    %c0_i32 = arith.constant 0 : i32
    %c0_i32_0 = arith.constant 0 : i32
    return %c0_i32, %arg1 : i32, i32
  }
  func.func @transform_3(%arg0: i32, %arg1: i32) -> (i32, i32) {
    %c0_i32 = arith.constant 0 : i32
    return %arg0, %arg1 : i32, i32
  }
}

</mosaic_0001>

<bundles_post_ra>
// kernel: tpu_custom_call.1
= control target key start
LH: loop header
LB: loop body
LE: loop exit
PB: predicated region body
PF: predicated region fallthrough
CT: control target
= control target key end

     0   :  { %8 = vsyncpa [#allocation3], 0  ;;  %s894_s0 = inlined_call_operand.hbm [shape: f32[8,32], index: 0, kind: input, shape index: {}]   ;;  %s895_s1 = inlined_call_operand.hbm [shape: f32[32,256], index: 1, kind: input, shape index: {}]   ;;  %s896_s2 = inlined_call_operand.hbm [shape: f32[1,256], index: 2, kind: input, shape index: {}]   ;;  %s897_s3 = inlined_call_operand.hbm [shape: f32[8,256], index: 3, kind: output, shape index: {}]  }
   0x1   :  { %9 = vsyncpa [#allocation6], 0 }
   0x2   :  { %11 = vsyncpa [#allocation6 + $0x1], 0 }
   0x3   :  { %12 = vsyncpa [#allocation4], 0 }
   0x4   :  { %14 = vsyncpa [#allocation4 + $0x1], 0  ;;  %s720_s12 = smov 0   ;;  %s722_s13 = smov 0  }
   0x5   :  { %s724_s14 = smov 0   ;;  %s726_s15 = smov 0  }
   0x6   :  { %s728_s16 = smov 0   ;;  %s730_s17 = smov 0  }
   0x7 LB: > { %s29_s18 = sadd.s32 1, %s690_s16  ;;  %s65_s19 = sadd.s32 1, %s682_s14  ;;  %s694_s17 = sphi %s730_s17, %s20_s17   ;;  %s690_s16 = sphi %s728_s16, %s908_s16   ;;  %s686_s15 = sphi %s726_s15, %s907_s15   ;;  %s682_s14 = sphi %s724_s14, %s906_s14   ;;  %s678_s13 = sphi %s722_s13, %s905_s13   ;;  %s674_s12 = sphi %s720_s12, %s904_s12  }
   0x8   : > { %p30_p0 = scmp.ge.s32.totalorder %s29_s18, 2  ;;  %p72_p1 = scmp.ne.s32.totalorder %s682_s14, %s678_s13 }
   0x9   : > { %p73_p2 = scmp.eq.s32.totalorder %s694_s17, 0  ;;  %p424_p3 = scmp.ge.s32.totalorder %s694_s17, 2 }
   0xa   : > { %s910_s18 = smov (%p30_p0, %s29_s18), 0  ;;  %p462_p5 = scmp.lt.s32.totalorder %s694_s17, 2 }
   0xb   : > { %p761_p4 = por %p73_p2, %p72_p1  ;;  %s62_s21 = ssub.s32 %s690_s16, %s910_s18 }
   0xc   : > { %s170_s22 = sand.u32 1, %s694_s17   ;;  %p63_p6 = scmp.eq.s32.totalorder %s62_s21, 0 }
   0xd   : > { %s172_s23 = sand.u32 1, %s682_s14   ;;  %s426_s24 = sshll.u32 %s690_s16, 3 }
   0xe   : > { %s772_s25 = scalar_select %p63_p6, %s682_s14, %s65_s19  }
   0xf   : > { %s425_s26 = sshll.u32 %s172_s23, 5  ;;  %s178_s29 = scalar_lea.hbm %s895_s1, %s426_s24 }
  0x10   : > { %s179_s30 = sshll.u32 %s178_s29, 4  ;;  %s174_s4 = scalar_lea.vmem [#allocation5], %s425_s26  ;;  %s180_s30 = int_to_ptr.hbm [resolvable:$true] %s179_s30 }
  0x11   : > { %s181_s5 = sshll.u32 %s174_s4, 4  ;;  %p783_p7 = pnand %p462_p5, %p761_p4  ;;  %s182_s5 = int_to_ptr.vmem [resolvable:$true] %s181_s5 }
  0x12   : > { %s787_s7 = scalar_lea.sflag [#allocation6], %s170_s22  ;;  %s696_s8 = smov 256  }
  0x13   : > { %s697_s9 = smov 128   ;;  %s698_s10 = smov 8  }
  0x14   : > { %453 = dma.hbm_to_vmem [thread:$0]  (!%p783_p7), %s180_s30, 512, %s182_s5, %s787_s7, %s696_s8, %s697_s9, %s698_s10  }
  0x15   : > { %s793_s11 = sadd.s32 4294967295, %s694_s17   ;;  %s421_s19 = sadd.s32 4294967294, %s694_s17  }
  0x16   : > { %p78_p8 = scmp.ne.s32.totalorder %s678_s13, %s674_s12  ;;  %p79_p9 = scmp.eq.s32.totalorder %s793_s11, 0 }
  0x17   : > { %p130_p10 = scmp.eq.s32.totalorder %s793_s11, 1  ;;  %p136_p11 = scmp.eq.s32.totalorder %s421_s19, 1 }
  0x18   : > { %p802_p12 = por %p79_p9, %p78_p8  ;;  %p422_p13 = scmp.ge.s32.totalorder %s694_s17, 1 }
  0x19   : > { %p810_p0 = por %p130_p10, %p72_p1  ;;  %p814_p2 = por %p136_p11, %p78_p8 }
  0x1a   : > { %p143_p4 = scmp.lt.s32.totalorder %s694_s17, 3  ;;  %s157_s27 = sshll.u32 %s894_s0, 4  ;;  %s158_s27 = int_to_ptr.hbm [resolvable:$true] %s157_s27 }
  0x1b   : > { %s699_s29 = smov [#allocation2]   ;;  %s197_s8 = scalar_lea.hbm %s896_s2, %s690_s16 }
  0x1c   : > { %p822_p5 = pnand %p422_p13, %p143_p4  ;;  %s159_s30 = sshll.u32 %s699_s29, 4  ;;  %s160_s30 = int_to_ptr.vmem [resolvable:$true] %s159_s30 }
  0x1d   : > { %s194_s9 = scalar_lea.vmem [#allocation7], %s172_s23  ;;  %s199_s19 = sshll.u32 %s197_s8, 4  ;;  %s200_s19 = int_to_ptr.hbm [resolvable:$true] %s199_s19 }
  0x1e   : > { %p446_p1 = pneg %p822_p5  ;;  %s201_s10 = sshll.u32 %s194_s9, 4  ;;  %s202_s10 = int_to_ptr.vmem [resolvable:$true] %s201_s10 }
  0x1f   : > { %456 = dma.hbm_to_vmem [thread:$0]  (!%p783_p7), %s200_s19, 16, %s202_s10, %s787_s7  }
  0x20   : > { %p447_p6 = pnand %p446_p1, %p79_p9  ;;  %210 = sbr.rel (%p822_p5) target bundleno = 181 (0xb5), region = 32 }
  0x22   : > { %449 = dma.hbm_to_vmem [thread:$0]  (!%p447_p6), %s158_s27, 128, %s160_s30, [#allocation3]  }
  0x25   : > { %661 = dma.done.wait (%p79_p9), [#allocation3], 128  }
  0x26   : > { %663 = vsyncadd (%p79_p9), [#allocation3], 4294967168  ;;  %s217_s23 = sand.u32 1, %s793_s11   ;;  %s847_s24 = sand.u32 1, %s678_s13  }
  0x27   : > { %s429_s26 = sshll.u32 %s847_s24, 5  ;;  %s218_s27 = scalar_lea.sflag [#allocation6], %s217_s23 }
  0x28   : > { %s221_s6 = scalar_lea.vmem [#allocation5], %s429_s26 }
  0x29   : > { %665 = dma.done.wait (%p802_p12), %s218_s27, 528  }
  0x2a   : > { %667 = vsyncadd (%p802_p12), %s218_s27, 4294966768  ;;  %v262_v0 = vld [vmem:[%s221_s6 + $0x18] sm:$0xff]  ;;  %v261_v1 = vld [vmem:[%s221_s6 + $0x10] sm:$0xff]  ;;  %s230_s7 = scalar_lea.vmem [#allocation7], %s847_s24  ;;  %vm267_vm0 = vcmask 261120   ;;  %s430_s11 = sshll.u32 %s847_s24, 3 }
  0x2b   : > { %283 = vmatpush.msra.mxu0 %v262_v0  ;;  %v260_v2 = vld [vmem:[%s221_s6 + $0x8] sm:$0xff]  ;;  %v259_v3 = vld [vmem:[%s221_s6] sm:$0xff]  ;;  %v258_v4 = vld [vmem:[#allocation2] sm:$0xff]  ;;  %s433_s28 = sshll.u32 %s686_s15, 3  ;;  %s257_s4 = scalar_lea.vmem [#allocation8], %s430_s11 }
  0x2c   : > { %s305_s30 = scalar_lea.hbm %s897_s3, %s433_s28  ;;  %v517_v5 = vld [vmem:[%s230_s7] ss:$0 sm:$0xff]  ;;  %s307_s5 = sshll.u32 %s257_s4, 4  ;;  %s308_s5 = int_to_ptr.vmem [resolvable:$true] %s307_s5 }
  0x2d   : > { %284 = vmatpush.msra.mxu0 %v261_v1  ;;  %s309_s8 = sshll.u32 %s305_s30, 4  ;;  %s293_s9 = scalar_lea.sflag [#allocation4], %s847_s24  ;;  %s310_s8 = int_to_ptr.hbm [resolvable:$true] %s309_s8 }
  0x2e   : > { %s622_s10 = sshra.s32 %s310_s8, 4  ;;  %s628_s26 = scalar_lea.hbm %s897_s3, 16  ;;  %s623_s10 = int_to_ptr.hbm [resolvable:$true] %s622_s10 }
  0x2f   : > { %285 = vmatpush.msra.mxu0 %v260_v2  ;;  %s624_s19 = scalar_lea.hbm %s623_s10, 8  ;;  %p629_p10 = scmp.lt.s32.totalorder %s623_s10, %s897_s3 }
  0x30   : > { %p625_p7 = scmp.ne.s32.totalorder %s623_s10, %s624_s19  ;;  %p630_p11 = scmp.lt.s32.totalorder %s628_s26, %s624_s19 }
  0x31   : > { %286 = vmatpush.msra.mxu0 %v259_v3 }
  0x32   : > { %431 = vmatmul.msk.f32.vlgmr.msra.gmra.mxu0 %vm267_vm0, %v258_v4  ;;  %p626_p8 = pnand %p625_p7, %p810_p0  ;;  %p631_p12 = por %p630_p11, %p629_p10 }
  0x34   : > { %p627_p9 = pneg %p626_p8 }
  0x36   : > { %p632_p13 = pnand %p631_p12, %p627_p9 }
  0xaf   : > { %v288_v6 = vpop.f32.mrf.mxu0 }
  0xb0   : > { %v289_v7 = vadd.f32 %v517_v5, %v288_v6 }
  0xb2   : > { %291 = vst [vmem:[%s257_s4] sm:$0xff] %v289_v7 }
  0xb3   : > { %635 = shalt.err (!%p632_p13)
}
  0xb4   : > { %444 = dma.vmem_to_hbm [thread:$0]  (%p810_p0), %s308_s5, 128, %s310_s8, %s293_s9  }
  0xb5 PF: > { %s321_s24 = sand.u32 1, %s674_s12   ;;  %p458_p4 = pnand %p424_p3, %p814_p2 }
  0xb6   : > { %s322_s7 = scalar_lea.sflag [#allocation4], %s321_s24 }
  0xb7   : > { %p459_p5 = pneg %p458_p4 }
  0xb9   : > { %669 = dma.done.wait (%p459_p5), %s322_s7, 128  }
  0xba   : > { %671 = vsyncadd (%p459_p5), %s322_s7, 4294967168  ;;  %s20_s17 = sadd.s32 1, %s694_s17   ;;  %s904_s12 = smov %s678_s13 }
  0xbb   : > { %p17_p1 = scmp.ge.s32.totalorder %s20_s17, 4   ;;  %s905_s13 = smov %s682_s14 }
  0xbc   : > { %s906_s14 = smov %s772_s25  ;;  %s907_s15 = smov %s690_s16 }
  0xbd   : > { %s908_s16 = smov %s910_s18  ;;  %19 = sbr.rel (!%p17_p1) target bundleno = 7 (0x7), region = 94 }
  0xc2   :  { %328 = vsyncpa [#allocation3], 1 }
  0xc3   :  { %330 = vsyncpa [#allocation3 + $0x1], 1 }
  0xc4   :  { %331 = vsyncpa [#allocation6], 1 }
  0xc5   :  { %333 = vsyncpa [#allocation6 + $0x1], 1 }
  0xc6   :  { %334 = vsyncpa [#allocation4], 1 }
  0xc7   :  { %336 = vsyncpa [#allocation4 + $0x1], 1 }

</bundles_post_ra>
